<compile_context>
chip_gen: v6e
topology: v6e:2x2x1
jax: 0.10.0
libtpu: 0.0.40
codegen_flags: <defaults>
</compile_context>

<pallas_src>
import jax
import jax.numpy as jnp
from jax.experimental import pallas as pl
from jax.experimental.pallas import tpu as pltpu

LANES = 128
ACC_ROWS = 8                       # per-block partial tile: (8, 128) f32 = 4 KiB
MAX_TILE_ROWS = 4096               # (4096, 128) f32 block = 2 MiB per input
VMEM_LIMIT_BYTES = 40 * 1024 * 1024  # 2 inputs x 2 bufs x 2 MiB = 16 MiB + headroom

_KEEP_DTYPES = (jnp.dtype(jnp.float32), jnp.dtype(jnp.bfloat16),
                jnp.dtype(jnp.float16))


def _make_dice_kernel(tile_rows, valid_rows):
    """Per-block reduction kernel for a (rows, 128) slab.

    tile_rows / valid_rows are Python ints (static): the tail-mask path is
    only *emitted* when the last block is actually partial, and only
    *executed* (via pl.when) on that last grid step.
    """
    needs_mask = (valid_rows % tile_rows) != 0
    fold = tile_rows // ACC_ROWS

    def _compute(x, y, o_ref):
        # Leading-axis sums = pure vreg adds (no XLU); result is (8, 128).
        xy = (x * y).reshape(fold, ACC_ROWS, LANES).sum(axis=0)
        xpy = (x + y).reshape(fold, ACC_ROWS, LANES).sum(axis=0)  # sum(x)+sum(y)
        o_ref[0, 0] = xy
        o_ref[0, 1] = xpy

    def kernel(x_ref, y_ref, o_ref):
        x = x_ref[...].astype(jnp.float32)
        y = y_ref[...].astype(jnp.float32)

        if needs_mask:
            i = pl.program_id(0)
            last = pl.num_programs(0) - 1

            @pl.when(i != last)
            def _full():
                _compute(x, y, o_ref)

            @pl.when(i == last)
            def _partial():
                row = jax.lax.broadcasted_iota(jnp.int32, x.shape, 0)
                keep = (i * tile_rows + row) < valid_rows
                _compute(jnp.where(keep, x, 0.0),
                         jnp.where(keep, y, 0.0),
                         o_ref)
        else:
            _compute(x, y, o_ref)

    return kernel


def _flatten_input(a):
    """Flatten row-major (matches torch .view(-1)); keep HBM bytes narrow."""
    flat = jnp.asarray(a).reshape(-1)
    dt = flat.dtype
    if dt in _KEEP_DTYPES:
        return flat
    if dt == jnp.dtype(jnp.bool_) or dt.itemsize == 1:
        # 0/1 segmentation masks are exact in bf16 -> half the HBM traffic.
        return flat.astype(jnp.bfloat16)
    return flat.astype(jnp.float32)


def _sublane_quantum(dtype):
    # f32 -> 8 rows; bf16/f16 -> 16 rows (packed sublanes).
    return 8 * max(1, 4 // jnp.dtype(dtype).itemsize)


def _finalize_loss(sum_xy, sum_xpy):
    num = 2.0 * sum_xy + 1.0
    denom = sum_xpy + 1.0
    return 1.0 - num / denom


def dice_loss(cur_input, target):
    xf = _flatten_input(cur_input)
    yf = _flatten_input(target)
    n = xf.shape[0]

    quantum = max(_sublane_quantum(xf.dtype), _sublane_quantum(yf.dtype))
    rows = n // LANES

    # Tiny inputs: not worth a kernel launch; plain JAX is exact & correct.
    if rows < quantum:
        x32 = xf.astype(jnp.float32)
        y32 = yf.astype(jnp.float32)
        return _finalize_loss(jnp.sum(x32 * y32), jnp.sum(x32 + y32))

    tile_rows = min(MAX_TILE_ROWS, (rows // quantum) * quantum)
    bulk = rows * LANES
    num_blocks = pl.cdiv(rows, tile_rows)

    xb = xf[:bulk].reshape(rows, LANES)
    yb = yf[:bulk].reshape(rows, LANES)

    partials = pl.pallas_call(
        _make_dice_kernel(tile_rows, rows),
        out_shape=jax.ShapeDtypeStruct((num_blocks, 2, ACC_ROWS, LANES),
                                       jnp.float32),
        grid_spec=pltpu.PrefetchScalarGridSpec(
            num_scalar_prefetch=0,
            grid=(num_blocks,),
            in_specs=[
                pl.BlockSpec((tile_rows, LANES), lambda i: (i, 0)),
                pl.BlockSpec((tile_rows, LANES), lambda i: (i, 0)),
            ],
            out_specs=pl.BlockSpec((1, 2, ACC_ROWS, LANES),
                                   lambda i: (i, 0, 0, 0)),
        ),
        compiler_params=pltpu.CompilerParams(
            dimension_semantics=("parallel",),   # v7x: both TCs split the grid
            vmem_limit_bytes=VMEM_LIMIT_BYTES,
        ),
    )(xb, yb)

    # Final (tiny) cross-lane reduction of the per-block partials.
    sum_xy = jnp.sum(partials[:, 0])
    sum_xpy = jnp.sum(partials[:, 1])

    if bulk < n:  # static <128-element remainder, folded in with plain JAX
        xr = xf[bulk:].astype(jnp.float32)
        yr = yf[bulk:].astype(jnp.float32)
        sum_xy = sum_xy + jnp.sum(xr * yr)
        sum_xpy = sum_xpy + jnp.sum(xr + yr)

    return _finalize_loss(sum_xy, sum_xpy)


def dice_loss_ref(cur_input, target):
    x = jnp.asarray(cur_input).reshape(-1).astype(jnp.float32)
    y = jnp.asarray(target).reshape(-1).astype(jnp.float32)
    intersection = jnp.sum(x * y)
    num = 2.0 * intersection + 1.0
    denom = jnp.sum(x) + jnp.sum(y) + 1.0
    return 1.0 - num / denom


if __name__ == "__main__":
    key = jax.random.PRNGKey(0)
    k1, k2 = jax.random.split(key)
    # shapes consistent with a segmentation-style prediction/target pair (NCHW)
    x = jax.random.uniform(k1, (2, 4, 16, 16), dtype=jnp.float32)           # predictions
    t = (jax.random.uniform(k2, (2, 4, 16, 16)) > 0.5).astype(jnp.float32)  # binary target

    out = jax.block_until_ready(dice_loss(x, t))
    ref = jax.block_until_ready(dice_loss_ref(x, t))

    assert jnp.allclose(out, ref, rtol=1e-5, atol=1e-6), (out, ref)
    print("KERNEL_OK")
</pallas_src>

<mosaic_0001>
module attributes {stable_mosaic.version = 11 : i64} {
  func.func @kernel(%arg0: i32, %arg1: memref<16x128xf32, #tpu.memory_space<vmem>>, %arg2: memref<16x128xf32, #tpu.memory_space<vmem>>, %arg3: memref<1x2x8x128xf32, #tpu.memory_space<vmem>>) attributes {dimension_semantics = [#tpu.dimension_semantics<parallel>], iteration_bounds = array<i64: 1>, scalar_prefetch = 0 : i64, scratch_operands = 0 : i64, tpu.core_type = #tpu.core_type<tc>, window_params = [{transform_indices = @transform_0, window_bounds = array<i64: 16, 128>}, {transform_indices = @transform_1, window_bounds = array<i64: 16, 128>}, {transform_indices = @transform_2, window_bounds = array<i64: 1, 2, 8, 128>}]} {
    %c0 = arith.constant 0 : index
    %c0_0 = arith.constant 0 : index
    %0 = vector.load %arg1[%c0, %c0_0] : memref<16x128xf32, #tpu.memory_space<vmem>>, vector<16x128xf32>
    %c0_1 = arith.constant 0 : index
    %c0_2 = arith.constant 0 : index
    %1 = vector.load %arg2[%c0_1, %c0_2] : memref<16x128xf32, #tpu.memory_space<vmem>>, vector<16x128xf32>
    %2 = arith.mulf %0, %1 : vector<16x128xf32>
    %3 = vector.shape_cast %2 : vector<16x128xf32> to vector<2x8x128xf32>
    %cst = arith.constant dense<0.000000e+00> : vector<8x128xf32>
    %4 = vector.multi_reduction <add>, %3, %cst [0] : vector<2x8x128xf32> to vector<8x128xf32>
    %5 = arith.addf %0, %1 : vector<16x128xf32>
    %6 = vector.shape_cast %5 : vector<16x128xf32> to vector<2x8x128xf32>
    %cst_3 = arith.constant dense<0.000000e+00> : vector<8x128xf32>
    %7 = vector.multi_reduction <add>, %6, %cst_3 [0] : vector<2x8x128xf32> to vector<8x128xf32>
    %c0_4 = arith.constant 0 : index
    %c0_5 = arith.constant 0 : index
    %c0_6 = arith.constant 0 : index
    %c0_7 = arith.constant 0 : index
    %8 = vector.load %arg3[%c0_4, %c0_5, %c0_6, %c0_7] : memref<1x2x8x128xf32, #tpu.memory_space<vmem>>, vector<1x1x8x128xf32>
    %9 = vector.shape_cast %8 : vector<1x1x8x128xf32> to vector<8x128xf32>
    %10 = vector.shape_cast %4 : vector<8x128xf32> to vector<1x1x8x128xf32>
    tpu.vector_store %arg3[%c0_4, %c0_5, %c0_6, %c0_7], %10 {strides = array<i32>} : memref<1x2x8x128xf32, #tpu.memory_space<vmem>>, vector<1x1x8x128xf32>,
    %c0_8 = arith.constant 0 : index
    %c1 = arith.constant 1 : index
    %c0_9 = arith.constant 0 : index
    %c0_10 = arith.constant 0 : index
    %11 = vector.load %arg3[%c0_8, %c1, %c0_9, %c0_10] : memref<1x2x8x128xf32, #tpu.memory_space<vmem>>, vector<1x1x8x128xf32>
    %12 = vector.shape_cast %11 : vector<1x1x8x128xf32> to vector<8x128xf32>
    %13 = vector.shape_cast %7 : vector<8x128xf32> to vector<1x1x8x128xf32>
    tpu.vector_store %arg3[%c0_8, %c1, %c0_9, %c0_10], %13 {strides = array<i32>} : memref<1x2x8x128xf32, #tpu.memory_space<vmem>>, vector<1x1x8x128xf32>,
    return
  }
  func.func @transform_0(%arg0: i32) -> (i32, i32) {
    %c0_i32 = arith.constant 0 : i32
    %c0_i32_0 = arith.constant 0 : i32
    return %arg0, %c0_i32 : i32, i32
  }
  func.func @transform_1(%arg0: i32) -> (i32, i32) {
    %c0_i32 = arith.constant 0 : i32
    %c0_i32_0 = arith.constant 0 : i32
    return %arg0, %c0_i32 : i32, i32
  }
  func.func @transform_2(%arg0: i32) -> (i32, i32, i32, i32) {
    %c0_i32 = arith.constant 0 : i32
    %c0_i32_0 = arith.constant 0 : i32
    %c0_i32_1 = arith.constant 0 : i32
    %c0_i32_2 = arith.constant 0 : i32
    return %arg0, %c0_i32, %c0_i32_0, %c0_i32_1 : i32, i32, i32, i32
  }
}

</mosaic_0001>

<bundles_post_ra>
// kernel: tpu_custom_call.1
= control target key start
LH: loop header
LB: loop body
LE: loop exit
PB: predicated region body
PF: predicated region fallthrough
CT: control target
= control target key end

     0   :  { %7 = vsyncpa [#allocation3], 0  ;;  %s180_s0 = inlined_call_operand.hbm [shape: f32[16,128], index: 0, kind: input, shape index: {}]   ;;  %s181_s1 = inlined_call_operand.hbm [shape: f32[16,128], index: 1, kind: input, shape index: {}]   ;;  %s182_s2 = inlined_call_operand.hbm [shape: f32[1,2,8,128], index: 2, kind: output, shape index: {}]  }
   0x1   :  { %8 = vsyncpa [#allocation6], 0 }
   0x2   :  { %9 = vsyncpa [#allocation4], 0  ;;  %s142_s9 = smov [#allocation2]  }
   0x3   :  { %s15_s10 = sshll.u32 %s142_s9, 4  ;;  %s16_s10 = int_to_ptr.vmem [resolvable:$true] %s15_s10 }
   0x4   :  { %s84_s11 = scalar_lea.vmem %s16_s10, 256  ;;  %p89_p1 = scmp.lt.s32.totalorder %s16_s10, %s16_s10 }
   0x5   :  { %p85_p0 = scmp.ne.s32.totalorder %s16_s10, %s84_s11  ;;  %p90_p2 = scmp.lt.s32.totalorder %s84_s11, %s84_s11 }
   0x7   :  { %p91_p3 = por %p90_p2, %p89_p1 }
   0x9   :  { %p92_p4 = pnand %p91_p3, %p85_p0 }
   0xb   :  { %95 = shalt.err (!%p92_p4)
}
   0xc   :  { %s143_s12 = smov 128   ;;  %s144_s13 = smov 8  }
   0xd   :  { %21 = dma.hbm_to_vmem [thread:$0]  %s180_s0, 256, %s16_s10, [#allocation3], %s143_s12, %s143_s12, %s144_s13  }
   0xe   :  { %s145_s16 = smov [#allocation5]  }
   0xf   :  { %s27_s17 = sshll.u32 %s145_s16, 4  ;;  %s28_s17 = int_to_ptr.vmem [resolvable:$true] %s27_s17 }
  0x10   :  { %s104_s18 = scalar_lea.vmem %s28_s17, 256  ;;  %p109_p6 = scmp.lt.s32.totalorder %s28_s17, %s28_s17 }
  0x11   :  { %p105_p5 = scmp.ne.s32.totalorder %s28_s17, %s104_s18  ;;  %p110_p7 = scmp.lt.s32.totalorder %s104_s18, %s104_s18 }
  0x13   :  { %p111_p8 = por %p110_p7, %p109_p6 }
  0x15   :  { %p112_p9 = pnand %p111_p8, %p105_p5 }
  0x17   :  { %115 = shalt.err (!%p112_p9)
}
  0x18   :  { %33 = dma.hbm_to_vmem [thread:$0]  %s181_s1, 256, %s28_s17, [#allocation6], %s143_s12, %s143_s12, %s144_s13  }
  0x19   :  { %136 = dma.done.wait [#allocation3], 256  }
  0x1a   :  { %137 = vsyncadd [#allocation3], 4294967040 }
  0x1b   :  { %138 = dma.done.wait [#allocation6], 256  }
  0x1c   :  { %139 = vsyncadd [#allocation6], 4294967040  ;;  %v40_v0 = vld [vmem:[#allocation2] sm:$0xff]  ;;  %v41_v1 = vld [vmem:[#allocation2 + $0x8] sm:$0xff]  ;;  %s146_s0 = smov [#allocation7]  }
  0x1d   :  { %v42_v2 = vld [vmem:[#allocation5] sm:$0xff]  ;;  %v43_v3 = vld [vmem:[#allocation5 + $0x8] sm:$0xff]  ;;  %s58_s21 = sshll.u32 %s146_s0, 4  ;;  %s59_s21 = int_to_ptr.vmem [resolvable:$true] %s58_s21 }
  0x1e   :  { %v44_v4 = vmul.f32 %v42_v2, %v40_v0  ;;  %v47_v5 = vadd.f32 %v42_v2, %v40_v0  ;;  %v45_v6 = vmul.f32 %v43_v3, %v41_v1  ;;  %v48_v7 = vadd.f32 %v43_v3, %v41_v1  ;;  %s116_s1 = scalar_lea.vmem %s59_s21, 256  ;;  %p121_p11 = scmp.lt.s32.totalorder %s59_s21, %s59_s21 }
  0x1f   :  { %p117_p10 = scmp.ne.s32.totalorder %s59_s21, %s116_s1  ;;  %p122_p12 = scmp.lt.s32.totalorder %s116_s1, %s116_s1 }
  0x20   :  { %v46_v8 = vadd.f32 %v45_v6, %v44_v4  ;;  %v49_v9 = vadd.f32 %v48_v7, %v47_v5 }
  0x21   :  { %p123_p13 = por %p122_p12, %p121_p11 }
  0x22   :  { %50 = vst [vmem:[#allocation7] sm:$0xff] %v46_v8  ;;  %52 = vst [vmem:[#allocation7 + $0x8] sm:$0xff] %v49_v9 }
  0x23   :  { %p124_p0 = pnand %p123_p13, %p117_p10 }
  0x25   :  { %127 = shalt.err (!%p124_p0)
}
  0x26   :  { %64 = dma.vmem_to_hbm [thread:$0]  %s59_s21, 256, %s182_s2, [#allocation4], %s143_s12, %s143_s12, %s144_s13  }
  0x27   :  { %140 = dma.done.wait [#allocation4], 256  }
  0x28   :  { %141 = vsyncadd [#allocation4], 4294967040 }
  0x29   :  { %68 = vsyncpa [#allocation3], 1 }
  0x2a   :  { %69 = vsyncpa [#allocation6], 1 }
  0x2b   :  { %70 = vsyncpa [#allocation4], 1 }

</bundles_post_ra>
